<compile_context>
chip_gen: v7x
topology: tpu7x:2x2x1
jax: 0.10.0
libtpu: 0.0.40
codegen_flags: <defaults>
</compile_context>

<pallas_src>
import functools

import jax
import jax.numpy as jnp
from jax import lax
from jax.experimental import pallas as pl
from jax.experimental.pallas import tpu as pltpu


_LANE = 128
_LANE_TILE_CAP = 1024      # multiple of 128
_ACC_SUB = 8               # sublane count of a 32-bit accumulator vreg


def _round_up(a, b):
    return (a + b - 1) // b * b


def _sublane_multiple(itemsize):
    # f32/int32 -> 8 sublanes, bf16/f16 -> 16, int8/fp8/bool -> 32
    return 8 * max(1, 4 // max(1, itemsize))


def _tpu_budgets():
    """(block_budget_bytes, vmem_limit_bytes) sized per TPU generation."""
    cap = 64 * 1024 * 1024
    try:
        info = pltpu.get_tpu_info()
        cap = int(getattr(info, "vmem_capacity_bytes", cap) or cap)
    except Exception:
        pass
    if cap >= 100 * 1024 * 1024:           # v5e / v6e: 128 MiB VMEM
        return 12 * 1024 * 1024, 64 * 1024 * 1024
    # v7x-class: 64 MiB VMEM per TensorCore -- keep blocks and limit modest.
    return 6 * 1024 * 1024, 48 * 1024 * 1024


def _maybe_buffered(in_block_bytes, n_steps):
    # Deeper pipelining for small blocks on long grids (hides DMA issue
    # latency; matters most at v7x's 3.2 TB/s HBM).
    if in_block_bytes <= (1 << 20) and n_steps >= 4:
        return dict(pipeline_mode=pl.Buffered(3))
    return {}


# --------------------- kernels: N > 1 (middle-axis reduction) ----------------

def _sum_mid_single_k_kernel(x_ref, o_ref, *, acc_dtype):
    # x_ref: (tm_b, K, tn) ; o_ref: (tm_b, 1, tn).  All of K in one block.
    x = x_ref[...].astype(acc_dtype)
    o_ref[...] = jnp.sum(x, axis=1, keepdims=True).astype(o_ref.dtype)


def _sum_mid_multi_k_kernel(x_ref, o_ref, acc_ref, *, k_total, tk, k_tiles,
                            acc_dtype, mask_k):
    # x_ref: (tm_b, tk, tn) ; acc_ref: (tm_b, 8, tn) ; o_ref: (tm_b, 1, tn)
    k = pl.program_id(2)
    last = k_tiles - 1

    @pl.when(k == 0)
    def _init():
        acc_ref[...] = jnp.zeros_like(acc_ref)

    def _accumulate(masked):
        x = x_ref[...].astype(acc_dtype)                       # (tm_b, tk, tn)
        if masked:
            row = k * tk + lax.broadcasted_iota(jnp.int32, x.shape, 1)
            x = jnp.where(row < k_total, x, jnp.zeros_like(x))
        tm_b, tkk, tn = x.shape
        if tkk % _ACC_SUB == 0:
            # Layout-preserving split of the sublane dim: per-step work is pure
            # VPU adds; the single sublane collapse happens in the final store.
            x = x.reshape(tm_b, tkk // _ACC_SUB, _ACC_SUB, tn)
            acc_ref[...] += jnp.sum(x, axis=1)
        else:  # unreachable with current tiling; kept for safety
            acc_ref[:, 0:1, :] += jnp.sum(x, axis=1, keepdims=True)

    if mask_k:
        @pl.when(k != last)
        def _full():
            _accumulate(False)

        @pl.when(k == last)
        def _partial():
            _accumulate(True)
    else:
        _accumulate(False)

    @pl.when(k == last)
    def _store():
        o_ref[...] = jnp.sum(acc_ref[...], axis=1,
                             keepdims=True).astype(o_ref.dtype)


# --------------------- kernels: N == 1 (last-axis reduction) -----------------

def _sum_last_single_k_kernel(x_ref, o_ref, *, acc_dtype):
    # x_ref: (tm, K) ; o_ref: (tm, 1).  All of K in one block.
    x = x_ref[...].astype(acc_dtype)
    o_ref[...] = jnp.sum(x, axis=1, keepdims=True).astype(o_ref.dtype)


def _sum_last_multi_k_kernel(x_ref, o_ref, acc_ref, *, k_total, tk, k_tiles,
                             acc_dtype, mask_k):
    # x_ref: (tm, tk) ; acc_ref: (tm, tk) ; o_ref: (tm, 1)
    k = pl.program_id(1)
    last = k_tiles - 1

    @pl.when(k == 0)
    def _init():
        acc_ref[...] = jnp.zeros_like(acc_ref)

    def _accumulate(masked):
        x = x_ref[...].astype(acc_dtype)                       # (tm, tk)
        if masked:
            col = k * tk + lax.broadcasted_iota(jnp.int32, x.shape, 1)
            x = jnp.where(col < k_total, x, jnp.zeros_like(x))
        # Full-width accumulator: per-step work is pure VPU; the single
        # cross-lane (XLU) reduce happens once in the final store.
        acc_ref[...] += x

    if mask_k:
        @pl.when(k != last)
        def _full():
            _accumulate(False)

        @pl.when(k == last)
        def _partial():
            _accumulate(True)
    else:
        _accumulate(False)

    @pl.when(k == last)
    def _store():
        o_ref[...] = jnp.sum(acc_ref[...], axis=1,
                             keepdims=True).astype(o_ref.dtype)


# ------------------------------- host wrappers --------------------------------

def _sum_mid(x, M, K, N, out_shape_nd, acc_dtype, out_dtype, itemsize,
             out_itemsize, sub_in, block_budget, vmem_limit):
    """Reduce the middle axis of the transpose-free (M, K, N) view."""
    x3 = x.reshape(M, K, N)

    # Balanced lane tiling (avoid a pathologically small tail tile).
    if N <= _LANE_TILE_CAP:
        tn = N
    else:
        tn = _round_up(pl.cdiv(N, pl.cdiv(N, _LANE_TILE_CAP)), _LANE)
    tn_pad = _round_up(tn, _LANE)

    # K tile: as much of K as the padding-aware budget allows.
    max_tk = max(sub_in, block_budget // (tn_pad * itemsize))
    if K <= max_tk:
        tk, k_tiles = K, 1
    else:
        tk = (max_tk // sub_in) * sub_in
        k_tiles = pl.cdiv(K, tk)
    tk_pad = _round_up(tk, sub_in)
    mask_k = (K % tk) != 0

    # Fold M into the block.  Account for the padded input block, the padded
    # output block (1 -> 8 sublanes, tn -> 128 lanes) and (if present) the
    # accumulator, so 2x double-buffering stays well inside vmem_limit.
    per_m = tk_pad * tn_pad * itemsize + _ACC_SUB * tn_pad * out_itemsize
    if k_tiles > 1:
        per_m += _ACC_SUB * tn_pad * 4
    tm_b = max(1, min(M, block_budget // per_m))
    m_tiles = pl.cdiv(M, tm_b)
    n_tiles = pl.cdiv(N, tn)

    # Guarantee >=2 parallel tiles so both v7x TensorCores get work.
    if m_tiles == 1 and n_tiles == 1:
        if M >= 2:
            tm_b = pl.cdiv(M, 2)
            m_tiles = pl.cdiv(M, tm_b)
        elif tn % (2 * _LANE) == 0:
            tn = tn // 2
            n_tiles = pl.cdiv(N, tn)

    in_block_bytes = tm_b * tk_pad * _round_up(tn, _LANE) * itemsize
    n_steps = m_tiles * n_tiles * k_tiles
    in_kwargs = _maybe_buffered(in_block_bytes, n_steps)

    if k_tiles == 1:
        kernel = functools.partial(_sum_mid_single_k_kernel, acc_dtype=acc_dtype)
        out3 = pl.pallas_call(
            kernel,
            out_shape=jax.ShapeDtypeStruct((M, 1, N), out_dtype),
            grid_spec=pltpu.PrefetchScalarGridSpec(
                num_scalar_prefetch=0,
                grid=(m_tiles, n_tiles),
                in_specs=[pl.BlockSpec((tm_b, K, tn), lambda m, j: (m, 0, j),
                                       **in_kwargs)],
                out_specs=pl.BlockSpec((tm_b, 1, tn), lambda m, j: (m, 0, j)),
            ),
            compiler_params=pltpu.CompilerParams(
                dimension_semantics=("parallel", "parallel"),
                vmem_limit_bytes=vmem_limit,
            ),
        )(x3)
    else:
        kernel = functools.partial(
            _sum_mid_multi_k_kernel, k_total=K, tk=tk, k_tiles=k_tiles,
            acc_dtype=acc_dtype, mask_k=mask_k)
        out3 = pl.pallas_call(
            kernel,
            out_shape=jax.ShapeDtypeStruct((M, 1, N), out_dtype),
            grid_spec=pltpu.PrefetchScalarGridSpec(
                num_scalar_prefetch=0,
                grid=(m_tiles, n_tiles, k_tiles),
                in_specs=[pl.BlockSpec((tm_b, tk, tn),
                                       lambda m, j, k: (m, k, j), **in_kwargs)],
                out_specs=pl.BlockSpec((tm_b, 1, tn),
                                       lambda m, j, k: (m, 0, j)),
                scratch_shapes=[pltpu.VMEM((tm_b, _ACC_SUB, tn), acc_dtype)],
            ),
            compiler_params=pltpu.CompilerParams(
                dimension_semantics=("parallel", "parallel", "arbitrary"),
                vmem_limit_bytes=vmem_limit,
            ),
        )(x3)
    return out3.reshape(out_shape_nd)


def _sum_last(x, M, K, out_shape_nd, acc_dtype, out_dtype, itemsize,
              out_itemsize, sub_in, block_budget, vmem_limit):
    """Reduce the last (lane) axis of the (M, K) view."""
    x2 = x.reshape(M, K)
    k_pad_bytes = _round_up(K, _LANE) * itemsize
    out_row_bytes = _LANE * out_itemsize          # (tm, 1) pads 1 -> 128 lanes

    if (k_pad_bytes + out_row_bytes) * sub_in <= block_budget:
        tk, k_tiles, mask_k = K, 1, False
        per_row = k_pad_bytes + out_row_bytes
    else:
        tk = 2048                                 # multiple of 128
        k_tiles = pl.cdiv(K, tk)
        mask_k = (K % tk) != 0
        # double-buffered input rows + full-width f32 acc + output rows
        per_row = tk * itemsize + tk * 4 + out_row_bytes

    tm = max(sub_in, (block_budget // per_row) // sub_in * sub_in)
    if tm >= M:
        tm = M
    m_tiles = pl.cdiv(M, tm)

    # Guarantee >=2 parallel tiles so both v7x TensorCores get work.
    if m_tiles == 1:
        half = _round_up(pl.cdiv(M, 2), sub_in)
        if half < M:
            tm = half
            m_tiles = pl.cdiv(M, tm)

    in_block_bytes = tm * _round_up(tk, _LANE) * itemsize
    n_steps = m_tiles * k_tiles
    in_kwargs = _maybe_buffered(in_block_bytes, n_steps)

    if k_tiles == 1:
        kernel = functools.partial(_sum_last_single_k_kernel, acc_dtype=acc_dtype)
        out2 = pl.pallas_call(
            kernel,
            out_shape=jax.ShapeDtypeStruct((M, 1), out_dtype),
            grid_spec=pltpu.PrefetchScalarGridSpec(
                num_scalar_prefetch=0,
                grid=(m_tiles,),
                in_specs=[pl.BlockSpec((tm, K), lambda i: (i, 0), **in_kwargs)],
                out_specs=pl.BlockSpec((tm, 1), lambda i: (i, 0)),
            ),
            compiler_params=pltpu.CompilerParams(
                dimension_semantics=("parallel",),
                vmem_limit_bytes=vmem_limit,
            ),
        )(x2)
    else:
        kernel = functools.partial(
            _sum_last_multi_k_kernel, k_total=K, tk=tk, k_tiles=k_tiles,
            acc_dtype=acc_dtype, mask_k=mask_k)
        out2 = pl.pallas_call(
            kernel,
            out_shape=jax.ShapeDtypeStruct((M, 1), out_dtype),
            grid_spec=pltpu.PrefetchScalarGridSpec(
                num_scalar_prefetch=0,
                grid=(m_tiles, k_tiles),
                in_specs=[pl.BlockSpec((tm, tk), lambda i, k: (i, k),
                                       **in_kwargs)],
                out_specs=pl.BlockSpec((tm, 1), lambda i, k: (i, 0)),
                scratch_shapes=[pltpu.VMEM((tm, tk), acc_dtype)],
            ),
            compiler_params=pltpu.CompilerParams(
                dimension_semantics=("parallel", "arbitrary"),
                vmem_limit_bytes=vmem_limit,
            ),
        )(x2)
    return out2.reshape(out_shape_nd)


@functools.partial(jax.jit, static_argnames=("axis",))
def pallas_sum(x, axis):
    ndim = x.ndim
    if axis < 0:
        axis += ndim
    assert 0 <= axis < ndim, axis

    shape = x.shape
    out_shape_nd = shape[:axis] + shape[axis + 1:]

    M = 1
    for d in shape[:axis]:
        M *= d
    K = shape[axis]
    N = 1
    for d in shape[axis + 1:]:
        N *= d

    if jnp.issubdtype(x.dtype, jnp.floating):
        acc_dtype = jnp.float32
        out_dtype = x.dtype
    else:
        # TODO(synk): torch.sum promotes int/bool to int64; without x64 enabled
        # we accumulate and return int32 (may wrap for very large reductions).
        acc_dtype = jnp.int32
        out_dtype = jnp.int32

    # Degenerate sizes: empty reduction axis or empty output -> zeros.
    if K == 0 or M == 0 or N == 0:
        return jnp.zeros(out_shape_nd, out_dtype)

    itemsize = jnp.dtype(x.dtype).itemsize
    out_itemsize = jnp.dtype(out_dtype).itemsize
    sub_in = _sublane_multiple(itemsize)
    block_budget, vmem_limit = _tpu_budgets()

    if N > 1:
        return _sum_mid(x, M, K, N, out_shape_nd, acc_dtype, out_dtype,
                        itemsize, out_itemsize, sub_in, block_budget,
                        vmem_limit)
    return _sum_last(x, M, K, out_shape_nd, acc_dtype, out_dtype,
                     itemsize, out_itemsize, sub_in, block_budget, vmem_limit)


if __name__ == "__main__":
    key = jax.random.PRNGKey(0)
    x = jax.random.normal(key, (2, 4, 16, 16), dtype=jnp.float32)

    # torch_sum(axis=1) equivalent, plus other axis conventions.
    for axis in (1, 0, 2, -1):
        out = jax.block_until_ready(pallas_sum(x, axis=axis))
        ref = jnp.sum(x, axis=axis)
        assert out.shape == ref.shape, (axis, out.shape, ref.shape)
        assert jnp.allclose(out, ref, atol=1e-5, rtol=1e-5), f"mismatch axis={axis}"

    # bf16 input: kernel accumulates in f32, casts only on the final store.
    xb = x.astype(jnp.bfloat16)
    outb = jax.block_until_ready(pallas_sum(xb, axis=1))
    refb = jnp.sum(xb.astype(jnp.float32), axis=1)
    assert outb.shape == refb.shape
    assert jnp.allclose(outb.astype(jnp.float32), refb, atol=1e-1, rtol=2e-2)

    # int input (torch promotes to int64; we return int32 -- see TODO above).
    xi = jax.random.randint(jax.random.PRNGKey(1), (2, 4, 16, 16), -5, 5,
                            dtype=jnp.int32)
    outi = jax.block_until_ready(pallas_sum(xi, axis=2))
    refi = jnp.sum(xi, axis=2, dtype=jnp.int32)
    assert outi.shape == refi.shape and bool(jnp.all(outi == refi))

    # Zero-length reduction axis returns zeros (matches torch.sum).
    xz = jnp.zeros((2, 0, 16, 16), dtype=jnp.float32)
    outz = jax.block_until_ready(pallas_sum(xz, axis=1))
    assert outz.shape == (2, 16, 16) and bool(jnp.all(outz == 0))

    print("KERNEL_OK")
</pallas_src>

<mosaic_0001>
module attributes {stable_mosaic.version = 11 : i64} {
  func.func @_sum_mid_single_k_kernel(%arg0: i32, %arg1: i32, %arg2: memref<1x4x256xf32, #tpu.memory_space<vmem>>, %arg3: memref<1x1x256xf32, #tpu.memory_space<vmem>>) attributes {dimension_semantics = [#tpu.dimension_semantics<parallel>, #tpu.dimension_semantics<parallel>], iteration_bounds = array<i64: 2, 1>, scalar_prefetch = 0 : i64, scratch_operands = 0 : i64, tpu.core_type = #tpu.core_type<tc>, window_params = [{transform_indices = @transform_0, window_bounds = array<i64: 1, 4, 256>}, {transform_indices = @transform_1, window_bounds = array<i64: 1, 1, 256>}]} {
    %c0 = arith.constant 0 : index
    %c0_0 = arith.constant 0 : index
    %c0_1 = arith.constant 0 : index
    %0 = vector.load %arg2[%c0, %c0_0, %c0_1] : memref<1x4x256xf32, #tpu.memory_space<vmem>>, vector<1x4x256xf32>
    %cst = arith.constant dense<0.000000e+00> : vector<1x256xf32>
    %1 = vector.multi_reduction <add>, %0, %cst [1] : vector<1x4x256xf32> to vector<1x256xf32>
    %2 = vector.shape_cast %1 : vector<1x256xf32> to vector<1x1x256xf32>
    %c0_2 = arith.constant 0 : index
    %c0_3 = arith.constant 0 : index
    %c0_4 = arith.constant 0 : index
    %3 = vector.load %arg3[%c0_2, %c0_3, %c0_4] : memref<1x1x256xf32, #tpu.memory_space<vmem>>, vector<1x1x256xf32>
    tpu.vector_store %arg3[%c0_2, %c0_3, %c0_4], %2 {strides = array<i32>} : memref<1x1x256xf32, #tpu.memory_space<vmem>>, vector<1x1x256xf32>,
    return
  }
  func.func @transform_0(%arg0: i32, %arg1: i32) -> (i32, i32, i32) {
    %c0_i32 = arith.constant 0 : i32
    %c0_i32_0 = arith.constant 0 : i32
    return %arg0, %c0_i32, %arg1 : i32, i32, i32
  }
  func.func @transform_1(%arg0: i32, %arg1: i32) -> (i32, i32, i32) {
    %c0_i32 = arith.constant 0 : i32
    %c0_i32_0 = arith.constant 0 : i32
    return %arg0, %c0_i32, %arg1 : i32, i32, i32
  }
}

</mosaic_0001>

<bundles_post_ra>
// kernel: pallas_sum.1
= control target key start
LH: loop header
LB: loop body
LE: loop exit
PB: predicated region body
PF: predicated region fallthrough
CT: control target
= control target key end

     0   :  { %s349_s6 = smov 0   ;;  %s351_s7 = smov 0   ;;  %s386_s0 = inlined_call_operand.vmem [shape: f32[2,4,256], index: 0, kind: input, shape index: {}]   ;;  %s387_s1 = inlined_call_operand.vmem [shape: f32[2,1,256], index: 1, kind: output, shape index: {}]  }
   0x1   :  { %s353_s8 = smov 0  }
   0x2 LB: > { %s23_s9 = sadd.s32 1, %s332_s7  ;;  %p281_p0 = scmp.ge.s32.totalorder %s336_s8, 1  ;;  %s336_s8 = sphi %s353_s8, %s11_s8   ;;  %s332_s7 = sphi %s351_s7, %s389_s7   ;;  %s328_s6 = sphi %s349_s6, %s388_s6  }
   0x3   : > { %p25_p1 = scmp.ge.s32.totalorder %s23_s9, 2  ;;  %p108_p2 = scmp.lt.s32.totalorder %s336_s8, 3 }
   0x5   : > { %s391_s9 = smov (%p25_p1, %s23_s9), 0  ;;  %p109_p3 = pnand %p281_p0, %p108_p2 }
   0x6   : > { %p136_p4 = scmp.lt.s32.totalorder (!%p109_p3), %s328_s6, 1  ;;  %vm158_vm0 = vcmask (!%p109_p3), 1043456   ;;  %v338_v9 = vmov (!%p109_p3), 1966171168   ;;  %v179_v11 = vlaneseq (!%p109_p3) }
   0x7   : > { %112 = sbr.rel (%p109_p3) target bundleno = 40 (0x28), region = 24  ;;  %v177_v10 = vunpack.c.l.s4 (!%p109_p3), %v338_v9 }
   0x8   : > { %v180_v17 = vshrl.u32 (!%p109_p3), %v179_v11, 7  ;;  %vm193_vm1 = vcmp.lt.s32.totalorder (!%p109_p3), %v179_v11, 256 }
   0x9   : > { %v178_v16 = vunpack.c.0.s8 (!%p109_p3), %v177_v10 }
   0xb   : > { %v181_v21 = vsub.s32 (!%p109_p3), %v178_v16, %v180_v17 }
   0xe   : > { %s393_s6 = smov (!%p136_p4, %s328_s6), 1 }
   0xf   : > { %s287_s10 = sshll.u32 %s393_s6, 3  ;;  %s284_s14 = sshll.u32 %s393_s6, 1 }
  0x10   : > { %s143_s13 = scalar_lea.vmem %s386_s0, %s287_s10  ;;  %s152_s17 = scalar_lea.vmem %s387_s1, %s284_s14 }
  0x11   : > { %v154_v0 = vld [vmem:[%s143_s13] sm:$0xff] }
  0x12   : > { %v156_v1 = vcombine.high %v154_v0, %v154_v0  ;;  %v159_v2 = vsel %vm158_vm0, %v154_v0, 0.0 }
  0x13   : > { %v160_v3 = vrot.slane %v159_v2, 4 }
  0x14   : > { %v166_v4 = vsel %vm158_vm0, %v156_v1, 0.0 }
  0x15   : > { %v161_v5 = vadd.f32 %v160_v3, %v159_v2  ;;  %v167_v6 = vrot.slane %v166_v4, 4 }
  0x17   : > { %v162_v7 = vrot.slane %v161_v5, 2  ;;  %v168_v8 = vadd.f32 %v167_v6, %v166_v4 }
  0x19   : > { %v163_v12 = vadd.f32 %v162_v7, %v161_v5  ;;  %v169_v13 = vrot.slane %v168_v8, 2 }
  0x1b   : > { %v164_v14 = vrot.slane %v163_v12, 1  ;;  %v170_v15 = vadd.f32 %v169_v13, %v168_v8 }
  0x1d   : > { %v165_v18 = vadd.f32 %v164_v14, %v163_v12  ;;  %v171_v19 = vrot.slane %v170_v15, 1 }
  0x1f   : > { %v172_v20 = vadd.f32 %v171_v19, %v170_v15 }
  0x21   : > { %v175_v22 = vcombine.low %v165_v18, %v172_v20 }
  0x23   : > { %v182_v23 = vrot.slane %v175_v22, %v181_v21 }
  0x25   : > { %v189_v24 = vrot.slane %v182_v23, %v181_v21 }
  0x27   : > { %195 = vst.msk [vmem:[%s152_s17] sm:$0x3] %vm193_vm1, %v189_v24 }
  0x28 PF: > { %s11_s8 = sadd.s32 1, %s336_s8   ;;  %s388_s6 = smov %s332_s7 }
  0x29   : > { %p8_p5 = scmp.ge.s32.totalorder %s11_s8, 4   ;;  %s389_s7 = smov %s391_s9 }
  0x2b   :  { %10 = sbr.rel (!%p8_p5) target bundleno = 2 (0x2), region = 54 }

</bundles_post_ra>
